<compile_context>
chip_gen: v6e
topology: v6e:2x2x1
jax: 0.10.0
libtpu: 0.0.40
codegen_flags: <defaults>
</compile_context>

<pallas_src>
import jax
import jax.numpy as jnp
from jax.experimental import pallas as pl
from jax.experimental.pallas import tpu as pltpu


def _pos_emb_dma_kernel(emb_hbm, out_hbm, sem):
    # Single HBM->HBM DMA of the first seq_len rows of the embedding table.
    seq_len = out_hbm.shape[0]
    cp = pltpu.make_async_copy(emb_hbm.at[pl.ds(0, seq_len), :], out_hbm, sem)
    cp.start()
    cp.wait()


def position_embedding_forward(x, embedding_table):
    """Return embedding_table[:x.shape[1]] via a single HBM->HBM Pallas DMA.

    x:               (batch, seq_len) integer token ids (only seq_len is used).
    embedding_table: (context_size, d_model).
    returns:         (seq_len, d_model) in the table's dtype.
    """
    seq_len = x.shape[1]
    context_size, d_model = embedding_table.shape
    assert seq_len <= context_size, "seq_len must not exceed context_size"

    out = pl.pallas_call(
        _pos_emb_dma_kernel,
        out_shape=jax.ShapeDtypeStruct((seq_len, d_model), embedding_table.dtype),
        # Leave both operands in HBM; the kernel moves data with one DMA.
        in_specs=[pl.BlockSpec(memory_space=pl.ANY)],
        out_specs=pl.BlockSpec(memory_space=pl.ANY),
        scratch_shapes=[pltpu.SemaphoreType.DMA],
    )(embedding_table)
    return out


if __name__ == "__main__":
    # Small, deterministic setup consistent with the module:
    #   context_size=16, d_model=32, batch=2, seq_len=8
    context_size = 16
    d_model = 32
    batch = 2
    seq_len = 8

    key = jax.random.PRNGKey(0)
    k_emb, k_x = jax.random.split(key)

    # nn.Embedding default init: N(0, 1) over (context_size, d_model).
    embedding_table = jax.random.normal(
        k_emb, (context_size, d_model), dtype=jnp.float32
    )

    # x is a batch of token ids; only its seq dimension matters for forward().
    x = jax.random.randint(k_x, (batch, seq_len), 0, context_size, dtype=jnp.int32)

    out = position_embedding_forward(x, embedding_table)
    out = jax.block_until_ready(out)

    # Reference check against plain JAX slice/gather.
    ref = embedding_table[jnp.arange(seq_len)]
    assert out.shape == (seq_len, d_model)
    assert out.dtype == jnp.float32
    assert jnp.allclose(out, ref), "mismatch vs reference embedding lookup"

    print("KERNEL_OK")
</pallas_src>

<mosaic_0001>
module attributes {stable_mosaic.version = 11 : i64} {
  func.func @_pos_emb_dma_kernel(%arg0: memref<16x32xf32, #tpu.memory_space<any>>, %arg1: memref<8x32xf32, #tpu.memory_space<any>>, %arg2: memref<!tpu.dma_semaphore, #tpu.memory_space<semaphore_mem>>) attributes {dimension_semantics = [], scalar_prefetch = 0 : i64, scratch_operands = 1 : i64, tpu.core_type = #tpu.core_type<tc>} {
    %c0_i32 = arith.constant 0 : i32
    %c0_i32_0 = arith.constant 0 : i32
    %0 = tpu.memref_slice %arg0[%c0_i32, %c0_i32_0] : memref<16x32xf32, #tpu.memory_space<any>> -> memref<8x32xf32, #tpu.memory_space<any>>
    tpu.enqueue_dma source(%0 : memref<8x32xf32, #tpu.memory_space<any>>) target(%arg1 : memref<8x32xf32, #tpu.memory_space<any>>) target_semaphore(%arg2 : memref<!tpu.dma_semaphore, #tpu.memory_space<semaphore_mem>>)
    %c0_i32_1 = arith.constant 0 : i32
    %c0_i32_2 = arith.constant 0 : i32
    %1 = tpu.memref_slice %arg0[%c0_i32_1, %c0_i32_2] : memref<16x32xf32, #tpu.memory_space<any>> -> memref<8x32xf32, #tpu.memory_space<any>>
    tpu.wait_dma2 semaphore(%arg2 : memref<!tpu.dma_semaphore, #tpu.memory_space<semaphore_mem>>) src(%1 : memref<8x32xf32, #tpu.memory_space<any>>) dst(%arg1 : memref<8x32xf32, #tpu.memory_space<any>>)
    return
  }
}

</mosaic_0001>

<bundles_post_ra>
// kernel: tpu_custom_call.1
= control target key start
LH: loop header
LB: loop body
LE: loop exit
PB: predicated region body
PF: predicated region fallthrough
CT: control target
= control target key end

     0   :  { %s28_s6 = smov [#allocation2]   ;;  %s29_s7 = smov 131072   ;;  %s47_s0 = inlined_call_operand.hbm [shape: f32[16,32], index: 0, kind: input, shape index: {}]   ;;  %s48_s1 = inlined_call_operand.hbm [shape: f32[8,32], index: 1, kind: output, shape index: {}]  }
   0x1   :  { %s30_s8 = smov 0  }
   0x2   :  { %12 = dma.general %s47_s0, 128, %s48_s1, %s28_s6, %s29_s7, [#allocation4], %s30_s8, 0  }
   0x3   :  { %26 = dma.done.wait [#allocation2], 128 }
   0x4   :  { %27 = vsyncadd [#allocation2], 4294967168 }
   0x5   :  { %16 = vsyncmov [#allocation2] }
   0x8   :  { %s17_s13 = vpop.sfrf %16 }
   0x9   :  { %p22_p0 = scmp.ne.s32.totalorder %s17_s13, 0 }
   0xb   :  { %21 = shalt.err (%p22_p0)  }

</bundles_post_ra>
